<compile_context>
chip_gen: v7x
topology: tpu7x:2x2x1
jax: 0.10.0
libtpu: 0.0.40
codegen_flags: <defaults>
</compile_context>

<pallas_src>
import functools

import jax
import jax.numpy as jnp
from jax.experimental import pallas as pl
from jax.experimental.pallas import tpu as pltpu

_VMEM_LIMIT_BYTES = 32 * 1024 * 1024   # explicit scoped-VMEM limit (safe on v5e/v6e/v7x)
_VMEM_BUDGET_BYTES = 20 * 1024 * 1024  # per-grid-step budget used to size the time tile


def _dwconv_ln_kernel(x_ref, halo_ref, w_ref, g_ref, b_ref, o_ref, *,
                      K, pad_l, pad_r, eps):
    """One (batch-tile, time-tile) grid step.

    x_ref   : (BT, C, TLi)                   unpadded input tile (C->sublanes, T->lanes)
    halo_ref: (BT, C, max(pad_l+pad_r, 1))   boundary cols [left pad_l | right pad_r]
    w_ref   : (C, K)                         depthwise conv weights
    g_ref   : (C, 1), b_ref: (C, 1)          LayerNorm affine params
    o_ref   : (BT, C, TLo)                   output tile
    """
    TLo = o_ref.shape[-1]

    x = x_ref[...].astype(jnp.float32)
    w = w_ref[...].astype(jnp.float32)                # hoisted: loaded once
    gamma = g_ref[...].astype(jnp.float32)[None]      # (1, C, 1)
    beta = b_ref[...].astype(jnp.float32)[None]       # (1, C, 1)

    # Fused reflection padding: assemble the (BT, C, TLo + K - 1) window from the
    # unpadded tile plus the tiny halo columns (no padded copy of x in HBM).
    if pad_l > 0 or pad_r > 0:
        halo = halo_ref[...].astype(jnp.float32)      # (BT, C, pad_l + pad_r)
        pieces = []
        if pad_l > 0:
            pieces.append(halo[:, :, :pad_l])
        pieces.append(x)
        if pad_r > 0:
            pieces.append(halo[:, :, pad_l:pad_l + pad_r])
        xp = jnp.concatenate(pieces, axis=-1)
    else:
        xp = x

    # Depthwise conv (cross-correlation): K statically shifted MACs along lanes.
    acc = xp[:, :, 0:TLo] * w[:, 0:1][None]
    for k in range(1, K):
        acc = acc + xp[:, :, k:k + TLo] * w[:, k:k + 1][None]

    # Per-timestep channel LayerNorm (reduction over C on the sublane axis).
    mean = jnp.mean(acc, axis=1, keepdims=True)
    var = jnp.mean(jnp.square(acc - mean), axis=1, keepdims=True)
    y = (acc - mean) * jax.lax.rsqrt(var + eps)
    y = y * gamma + beta
    o_ref[...] = y.astype(o_ref.dtype)


def _pick_b_tile(B, max_bt=8):
    # Fold several batch rows per grid step to amortize the ~0.35us/step cost.
    for bt in range(min(B, max_bt), 0, -1):
        if B % bt == 0:
            return bt
    return 1


def _pick_l_tile(L, per_col_bytes):
    # Biggest time tile whose per-step footprint fits the VMEM budget; keeps VMEM
    # bounded for long sequences (v7x: 64 MiB/TC) while staying lane-dense.
    if L * per_col_bytes <= _VMEM_BUDGET_BYTES:
        return L
    tl = max((_VMEM_BUDGET_BYTES // per_col_bytes) // 128 * 128, 128)
    while tl >= 128:
        if L % tl == 0:
            return tl
        tl -= 128
    # TODO(synk): a ragged last time tile needs overlapping (Element-indexed)
    # halo blocks; fall back to a single full-length tile for such lengths.
    return L


def depthwise_conv1d(x_ncl, weight_ck, gamma_c, beta_c, *, causal=False, eps=1e-5):
    """x_ncl: (B, C, L); weight_ck: (C, K); gamma/beta: (C,). Returns (B, C, L_out)."""
    B, C, L = x_ncl.shape
    K = weight_ck.shape[1]
    # Identical to the PyTorch module: the causal branch reflect-pads on the right.
    pad_l, pad_r = (0, K - 1) if causal else (K // 2, K // 2)
    L_out = L + pad_l + pad_r - (K - 1)
    Kh = max(pad_l + pad_r, 1)

    BT = _pick_b_tile(B)
    itemsize = jnp.dtype(x_ncl.dtype).itemsize
    # Rough per-time-column VMEM: double-buffered in/out blocks + f32 temporaries.
    per_col_bytes = BT * C * (4 * itemsize + 4 * 4)
    if L_out == L:
        TLi = TLo = _pick_l_tile(L, per_col_bytes)
    else:
        TLi, TLo = L, L_out          # even K, non-causal: single time tile
    if L // TLi > 1 and TLi < max(pad_l, pad_r):
        TLi = TLo = L                # degenerate: halo wider than tile
    nB, nL = B // BT, L // TLi

    # Tiny per-tile halo columns (nL, B, C, Kh): reflected edges at the sequence
    # boundaries, plain neighbour columns at interior tile boundaries.  This is
    # the fused ReflectionPad1d — no full-size padded copy of x in HBM.
    halos = []
    for j in range(nL):
        s, e = j * TLi, (j + 1) * TLi
        cols = []
        if pad_l > 0:
            cols.append(jnp.flip(x_ncl[:, :, 1:pad_l + 1], axis=-1) if s == 0
                        else x_ncl[:, :, s - pad_l:s])
        if pad_r > 0:
            cols.append(jnp.flip(x_ncl[:, :, L - 1 - pad_r:L - 1], axis=-1) if e >= L
                        else x_ncl[:, :, e:e + pad_r])
        if not cols:                                   # K == 1: dummy, never read
            cols.append(jnp.zeros((B, C, 1), x_ncl.dtype))
        halos.append(cols[0] if len(cols) == 1 else jnp.concatenate(cols, axis=-1))
    halo = jnp.stack(halos, axis=0)                    # (nL, B, C, Kh)

    g = gamma_c.reshape(C, 1)
    b = beta_c.reshape(C, 1)

    kernel = functools.partial(_dwconv_ln_kernel, K=K, pad_l=pad_l, pad_r=pad_r, eps=eps)

    return pl.pallas_call(
        kernel,
        out_shape=jax.ShapeDtypeStruct((B, C, L_out), x_ncl.dtype),
        grid=(nB, nL),
        in_specs=[
            pl.BlockSpec((BT, C, TLi), lambda i, j: (i, 0, j)),
            pl.BlockSpec((None, BT, C, Kh), lambda i, j: (j, i, 0, 0)),
            pl.BlockSpec((C, K), lambda i, j: (0, 0)),
            pl.BlockSpec((C, 1), lambda i, j: (0, 0)),
            pl.BlockSpec((C, 1), lambda i, j: (0, 0)),
        ],
        out_specs=pl.BlockSpec((BT, C, TLo), lambda i, j: (i, 0, j)),
        compiler_params=pltpu.CompilerParams(
            dimension_semantics=("parallel", "parallel"),
            vmem_limit_bytes=_VMEM_LIMIT_BYTES,
        ),
    )(x_ncl, halo, weight_ck, g, b)


def _reference(x_ncl, weight_ck, gamma_c, beta_c, *, causal=False, eps=1e-5):
    B, C, L = x_ncl.shape
    K = weight_ck.shape[1]
    pad = (0, K - 1) if causal else (K // 2, K // 2)
    xp = jnp.pad(x_ncl, ((0, 0), (0, 0), pad), mode="reflect")
    L_out = xp.shape[-1] - (K - 1)
    out = jnp.zeros((B, C, L_out), jnp.float32)
    for k in range(K):
        out = out + xp[:, :, k:k + L_out] * weight_ck[:, k][None, :, None]
    mean = out.mean(axis=1, keepdims=True)
    var = ((out - mean) ** 2).mean(axis=1, keepdims=True)
    y = (out - mean) * jax.lax.rsqrt(var + eps)
    return y * gamma_c[None, :, None] + beta_c[None, :, None]


if __name__ == "__main__":
    # Module config: channels=4, kernel_size=7, norm='layernorm'
    B, C, L, K = 2, 4, 16, 7

    key = jax.random.PRNGKey(0)
    kx, kw, kg, kb = jax.random.split(key, 4)

    x = jax.random.normal(kx, (B, C, L), dtype=jnp.float32)             # NCL input
    # nn.Conv1d(C, C, K, groups=C, bias=False).weight is (C, 1, K) -> pass as (C, K)
    weight = jax.random.normal(kw, (C, K), dtype=jnp.float32) / jnp.sqrt(K)
    gamma = 1.0 + 0.1 * jax.random.normal(kg, (C,), dtype=jnp.float32)  # LN weight
    beta = 0.1 * jax.random.normal(kb, (C,), dtype=jnp.float32)         # LN bias

    for causal in (False, True):
        out = jax.block_until_ready(
            depthwise_conv1d(x, weight, gamma, beta, causal=causal))
        ref = _reference(x, weight, gamma, beta, causal=causal)
        assert out.shape == ref.shape, (out.shape, ref.shape)
        err = float(jnp.max(jnp.abs(out - ref)))
        assert jnp.allclose(out, ref, atol=1e-5, rtol=1e-5), err

    print("KERNEL_OK")
</pallas_src>

<mosaic_0001>
module attributes {stable_mosaic.version = 11 : i64} {
  func.func @_dwconv_ln_kernel(%arg0: i32, %arg1: i32, %arg2: memref<2x4x16xf32, #tpu.memory_space<vmem>>, %arg3: memref<1x2x4x6xf32, #tpu.memory_space<vmem>>, %arg4: memref<4x7xf32, #tpu.memory_space<vmem>>, %arg5: memref<4x1xf32, #tpu.memory_space<vmem>>, %arg6: memref<4x1xf32, #tpu.memory_space<vmem>>, %arg7: memref<2x4x16xf32, #tpu.memory_space<vmem>>) attributes {dimension_semantics = [#tpu.dimension_semantics<parallel>, #tpu.dimension_semantics<parallel>], iteration_bounds = array<i64: 1, 1>, scalar_prefetch = 0 : i64, scratch_operands = 0 : i64, tpu.core_type = #tpu.core_type<tc>, window_params = [{transform_indices = @transform_0, window_bounds = array<i64: 2, 4, 16>}, {transform_indices = @transform_1, window_bounds = array<i64: 1, 2, 4, 6>}, {pipeline_mode = #tpu.pipeline_mode<synchronous>, transform_indices = @transform_2, window_bounds = array<i64: 4, 7>}, {pipeline_mode = #tpu.pipeline_mode<synchronous>, transform_indices = @transform_3, window_bounds = array<i64: 4, 1>}, {pipeline_mode = #tpu.pipeline_mode<synchronous>, transform_indices = @transform_4, window_bounds = array<i64: 4, 1>}, {transform_indices = @transform_5, window_bounds = array<i64: 2, 4, 16>}]} {
    %c0 = arith.constant 0 : index
    %c0_0 = arith.constant 0 : index
    %c0_1 = arith.constant 0 : index
    %0 = vector.load %arg2[%c0, %c0_0, %c0_1] : memref<2x4x16xf32, #tpu.memory_space<vmem>>, vector<2x4x16xf32>
    %c0_2 = arith.constant 0 : index
    %c0_3 = arith.constant 0 : index
    %1 = vector.load %arg4[%c0_2, %c0_3] : memref<4x7xf32, #tpu.memory_space<vmem>>, vector<4x7xf32>
    %c0_4 = arith.constant 0 : index
    %c0_5 = arith.constant 0 : index
    %2 = vector.load %arg5[%c0_4, %c0_5] : memref<4x1xf32, #tpu.memory_space<vmem>>, vector<4x1xf32>
    %3 = vector.shape_cast %2 : vector<4x1xf32> to vector<1x4x1xf32>
    %c0_6 = arith.constant 0 : index
    %c0_7 = arith.constant 0 : index
    %4 = vector.load %arg6[%c0_6, %c0_7] : memref<4x1xf32, #tpu.memory_space<vmem>>, vector<4x1xf32>
    %5 = vector.shape_cast %4 : vector<4x1xf32> to vector<1x4x1xf32>
    %c0_8 = arith.constant 0 : index
    %c0_9 = arith.constant 0 : index
    %c0_10 = arith.constant 0 : index
    %c0_11 = arith.constant 0 : index
    %6 = vector.load %arg3[%c0_8, %c0_9, %c0_10, %c0_11] : memref<1x2x4x6xf32, #tpu.memory_space<vmem>>, vector<1x2x4x6xf32>
    %7 = vector.shape_cast %6 : vector<1x2x4x6xf32> to vector<2x4x6xf32>
    %8 = vector.extract_strided_slice %7 {offsets = [0, 0, 0], sizes = [2, 4, 3], strides = [1, 1, 1]} : vector<2x4x6xf32> to vector<2x4x3xf32>
    %9 = vector.extract_strided_slice %7 {offsets = [0, 0, 3], sizes = [2, 4, 3], strides = [1, 1, 1]} : vector<2x4x6xf32> to vector<2x4x3xf32>
    %10 = tpu.concatenate %8, %0, %9 in 2 : vector<2x4x3xf32>, vector<2x4x16xf32>, vector<2x4x3xf32> -> vector<2x4x22xf32>
    %11 = vector.extract_strided_slice %10 {offsets = [0, 0, 0], sizes = [2, 4, 16], strides = [1, 1, 1]} : vector<2x4x22xf32> to vector<2x4x16xf32>
    %12 = vector.extract_strided_slice %1 {offsets = [0, 0], sizes = [4, 1], strides = [1, 1]} : vector<4x7xf32> to vector<4x1xf32>
    %13 = vector.shape_cast %12 : vector<4x1xf32> to vector<1x4x1xf32>
    %14 = vector.broadcast %13 : vector<1x4x1xf32> to vector<2x4x16xf32>
    %15 = arith.mulf %11, %14 : vector<2x4x16xf32>
    %16 = vector.extract_strided_slice %10 {offsets = [0, 0, 1], sizes = [2, 4, 16], strides = [1, 1, 1]} : vector<2x4x22xf32> to vector<2x4x16xf32>
    %17 = vector.extract_strided_slice %1 {offsets = [0, 1], sizes = [4, 1], strides = [1, 1]} : vector<4x7xf32> to vector<4x1xf32>
    %18 = vector.shape_cast %17 : vector<4x1xf32> to vector<1x4x1xf32>
    %19 = vector.broadcast %18 : vector<1x4x1xf32> to vector<2x4x16xf32>
    %20 = arith.mulf %16, %19 : vector<2x4x16xf32>
    %21 = arith.addf %15, %20 : vector<2x4x16xf32>
    %22 = vector.extract_strided_slice %10 {offsets = [0, 0, 2], sizes = [2, 4, 16], strides = [1, 1, 1]} : vector<2x4x22xf32> to vector<2x4x16xf32>
    %23 = vector.extract_strided_slice %1 {offsets = [0, 2], sizes = [4, 1], strides = [1, 1]} : vector<4x7xf32> to vector<4x1xf32>
    %24 = vector.shape_cast %23 : vector<4x1xf32> to vector<1x4x1xf32>
    %25 = vector.broadcast %24 : vector<1x4x1xf32> to vector<2x4x16xf32>
    %26 = arith.mulf %22, %25 : vector<2x4x16xf32>
    %27 = arith.addf %21, %26 : vector<2x4x16xf32>
    %28 = vector.extract_strided_slice %10 {offsets = [0, 0, 3], sizes = [2, 4, 16], strides = [1, 1, 1]} : vector<2x4x22xf32> to vector<2x4x16xf32>
    %29 = vector.extract_strided_slice %1 {offsets = [0, 3], sizes = [4, 1], strides = [1, 1]} : vector<4x7xf32> to vector<4x1xf32>
    %30 = vector.shape_cast %29 : vector<4x1xf32> to vector<1x4x1xf32>
    %31 = vector.broadcast %30 : vector<1x4x1xf32> to vector<2x4x16xf32>
    %32 = arith.mulf %28, %31 : vector<2x4x16xf32>
    %33 = arith.addf %27, %32 : vector<2x4x16xf32>
    %34 = vector.extract_strided_slice %10 {offsets = [0, 0, 4], sizes = [2, 4, 16], strides = [1, 1, 1]} : vector<2x4x22xf32> to vector<2x4x16xf32>
    %35 = vector.extract_strided_slice %1 {offsets = [0, 4], sizes = [4, 1], strides = [1, 1]} : vector<4x7xf32> to vector<4x1xf32>
    %36 = vector.shape_cast %35 : vector<4x1xf32> to vector<1x4x1xf32>
    %37 = vector.broadcast %36 : vector<1x4x1xf32> to vector<2x4x16xf32>
    %38 = arith.mulf %34, %37 : vector<2x4x16xf32>
    %39 = arith.addf %33, %38 : vector<2x4x16xf32>
    %40 = vector.extract_strided_slice %10 {offsets = [0, 0, 5], sizes = [2, 4, 16], strides = [1, 1, 1]} : vector<2x4x22xf32> to vector<2x4x16xf32>
    %41 = vector.extract_strided_slice %1 {offsets = [0, 5], sizes = [4, 1], strides = [1, 1]} : vector<4x7xf32> to vector<4x1xf32>
    %42 = vector.shape_cast %41 : vector<4x1xf32> to vector<1x4x1xf32>
    %43 = vector.broadcast %42 : vector<1x4x1xf32> to vector<2x4x16xf32>
    %44 = arith.mulf %40, %43 : vector<2x4x16xf32>
    %45 = arith.addf %39, %44 : vector<2x4x16xf32>
    %46 = vector.extract_strided_slice %10 {offsets = [0, 0, 6], sizes = [2, 4, 16], strides = [1, 1, 1]} : vector<2x4x22xf32> to vector<2x4x16xf32>
    %47 = vector.extract_strided_slice %1 {offsets = [0, 6], sizes = [4, 1], strides = [1, 1]} : vector<4x7xf32> to vector<4x1xf32>
    %48 = vector.shape_cast %47 : vector<4x1xf32> to vector<1x4x1xf32>
    %49 = vector.broadcast %48 : vector<1x4x1xf32> to vector<2x4x16xf32>
    %50 = arith.mulf %46, %49 : vector<2x4x16xf32>
    %51 = arith.addf %45, %50 : vector<2x4x16xf32>
    %cst = arith.constant dense<0.000000e+00> : vector<2x16xf32>
    %52 = vector.multi_reduction <add>, %51, %cst [1] : vector<2x4x16xf32> to vector<2x16xf32>
    %53 = vector.shape_cast %52 : vector<2x16xf32> to vector<2x1x16xf32>
    %cst_12 = arith.constant 4.000000e+00 : f32
    %54 = vector.broadcast %cst_12 : f32 to vector<2x1x16xf32>
    %55 = arith.divf %53, %54 : vector<2x1x16xf32>
    %56 = vector.broadcast %55 : vector<2x1x16xf32> to vector<2x4x16xf32>
    %57 = arith.subf %51, %56 : vector<2x4x16xf32>
    %58 = arith.mulf %57, %57 : vector<2x4x16xf32>
    %cst_13 = arith.constant dense<0.000000e+00> : vector<2x16xf32>
    %59 = vector.multi_reduction <add>, %58, %cst_13 [1] : vector<2x4x16xf32> to vector<2x16xf32>
    %60 = vector.shape_cast %59 : vector<2x16xf32> to vector<2x1x16xf32>
    %cst_14 = arith.constant 4.000000e+00 : f32
    %61 = vector.broadcast %cst_14 : f32 to vector<2x1x16xf32>
    %62 = arith.divf %60, %61 : vector<2x1x16xf32>
    %63 = vector.broadcast %55 : vector<2x1x16xf32> to vector<2x4x16xf32>
    %64 = arith.subf %51, %63 : vector<2x4x16xf32>
    %cst_15 = arith.constant 9.99999974E-6 : f32
    %65 = vector.broadcast %cst_15 : f32 to vector<2x1x16xf32>
    %66 = arith.addf %62, %65 : vector<2x1x16xf32>
    %67 = math.rsqrt %66 : vector<2x1x16xf32>
    %68 = vector.broadcast %67 : vector<2x1x16xf32> to vector<2x4x16xf32>
    %69 = arith.mulf %64, %68 : vector<2x4x16xf32>
    %70 = vector.broadcast %3 : vector<1x4x1xf32> to vector<2x4x16xf32>
    %71 = arith.mulf %69, %70 : vector<2x4x16xf32>
    %72 = vector.broadcast %5 : vector<1x4x1xf32> to vector<2x4x16xf32>
    %73 = arith.addf %71, %72 : vector<2x4x16xf32>
    %c0_16 = arith.constant 0 : index
    %c0_17 = arith.constant 0 : index
    %c0_18 = arith.constant 0 : index
    %74 = vector.load %arg7[%c0_16, %c0_17, %c0_18] : memref<2x4x16xf32, #tpu.memory_space<vmem>>, vector<2x4x16xf32>
    tpu.vector_store %arg7[%c0_16, %c0_17, %c0_18], %73 {strides = array<i32>} : memref<2x4x16xf32, #tpu.memory_space<vmem>>, vector<2x4x16xf32>,
    return
  }
  func.func @transform_0(%arg0: i32, %arg1: i32) -> (i32, i32, i32) {
    %c0_i32 = arith.constant 0 : i32
    %c0_i32_0 = arith.constant 0 : i32
    return %arg0, %c0_i32, %arg1 : i32, i32, i32
  }
  func.func @transform_1(%arg0: i32, %arg1: i32) -> (i32, i32, i32, i32) {
    %c0_i32 = arith.constant 0 : i32
    %c0_i32_0 = arith.constant 0 : i32
    %c0_i32_1 = arith.constant 0 : i32
    return %arg1, %arg0, %c0_i32, %c0_i32_0 : i32, i32, i32, i32
  }
  func.func @transform_2(%arg0: i32, %arg1: i32) -> (i32, i32) {
    %c0_i32 = arith.constant 0 : i32
    %c0_i32_0 = arith.constant 0 : i32
    %c0_i32_1 = arith.constant 0 : i32
    return %c0_i32, %c0_i32_0 : i32, i32
  }
  func.func @transform_3(%arg0: i32, %arg1: i32) -> (i32, i32) {
    %c0_i32 = arith.constant 0 : i32
    %c0_i32_0 = arith.constant 0 : i32
    %c0_i32_1 = arith.constant 0 : i32
    return %c0_i32, %c0_i32_0 : i32, i32
  }
  func.func @transform_4(%arg0: i32, %arg1: i32) -> (i32, i32) {
    %c0_i32 = arith.constant 0 : i32
    %c0_i32_0 = arith.constant 0 : i32
    %c0_i32_1 = arith.constant 0 : i32
    return %c0_i32, %c0_i32_0 : i32, i32
  }
  func.func @transform_5(%arg0: i32, %arg1: i32) -> (i32, i32, i32) {
    %c0_i32 = arith.constant 0 : i32
    %c0_i32_0 = arith.constant 0 : i32
    return %arg0, %c0_i32, %arg1 : i32, i32, i32
  }
}

</mosaic_0001>

<bundles_post_ra>
// kernel: tpu_custom_call.1
= control target key start
LH: loop header
LB: loop body
LE: loop exit
PB: predicated region body
PF: predicated region fallthrough
CT: control target
= control target key end

     0   :  { %10 = vsyncpa [#allocation3], 0  ;;  %s423_s0 = inlined_call_operand.vmem [shape: f32[2,4,16], index: 0, kind: input, shape index: {}]   ;;  %s424_s1 = inlined_call_operand.hbm [shape: f32[1,2,4,6], index: 1, kind: input, shape index: {}]   ;;  %s425_s2 = inlined_call_operand.vmem [shape: f32[4,7], index: 2, kind: input, shape index: {}]   ;;  %s426_s3 = inlined_call_operand.vmem [shape: f32[4,1], index: 3, kind: input, shape index: {}]   ;;  %s427_s4 = inlined_call_operand.vmem [shape: f32[4,1], index: 4, kind: input, shape index: {}]   ;;  %s428_s5 = inlined_call_operand.hbm [shape: f32[2,4,16], index: 5, kind: output, shape index: {}]  }
   0x1   :  { %11 = vsyncpa [#allocation4], 0  ;;  %s323_s18 = smov [#allocation2]   ;;  %s275_s22 = scalar_lea.hbm %s424_s1, 128 }
   0x2   :  { %s19_s19 = sshll.u32 %s323_s18, 4  ;;  %p276_p0 = scmp.ne.s32.totalorder %s424_s1, %s275_s22  ;;  %s20_s19 = int_to_ptr.vmem [resolvable:$true] %s19_s19 }
   0x3   :  { %p279_p1 = scmp.lt.u32.totalorder %s275_s22, %s424_s1 }
   0x5   :  { %p281_p2 = pnand %p279_p1, %p276_p0 }
   0x7   :  { %284 = shalt.err (!%p281_p2)
}
   0x8   :  { %s285_s27 = scalar_lea.vmem %s20_s19, 128  ;;  %p290_p4 = scmp.lt.s32.totalorder %s20_s19, %s20_s19 }
   0x9   :  { %p286_p3 = scmp.ne.s32.totalorder %s20_s19, %s285_s27  ;;  %p291_p5 = scmp.lt.s32.totalorder %s285_s27, %s285_s27 }
   0xb   :  { %p292_p6 = por %p291_p5, %p290_p4 }
   0xd   :  { %p293_p7 = pnand %p292_p6, %p286_p3 }
   0xf   :  { %296 = shalt.err (!%p293_p7)
}
  0x10   :  { %s324_s28 = smov 64   ;;  %s325_s29 = smov 4  }
  0x11   :  { %25 = dma.hbm_to_vmem [thread:$0]  %s424_s1, 128, %s20_s19, [#allocation3], %s324_s28, %s324_s28, %s325_s29  }
  0x12   :  { %319 = dma.done.wait [#allocation3], 128  }
  0x13   :  { %320 = vsyncadd [#allocation3], 4294967168  ;;  %v326_v0 = vmov 3   ;;  %v327_v1 = vmov 1   ;;  %v37_v2 = vld [vmem:[%s425_s2] sm:$0xf] }
  0x14   :  { %265 = vset.pattern.permute.xlu1 %v326_v0  ;;  %263 = vset.pattern.permute.xlu0 %v327_v1  ;;  %v35_v3 = vld [vmem:[%s423_s0] sm:$0xf]  ;;  %v328_v4 = vmov 2   ;;  %s329_s11 = smov 3   ;;  %v36_v5 = vld [vmem:[%s423_s0 + $0x4] sm:$0xf] }
  0x15   :  { %104 = vperm.xlu1 %265, %v37_v2   ;;  %72 = vperm.xlu0 %263, %v37_v2   ;;  %v330_v6 = vmov 5   ;;  %v40_v7 = vld [vmem:[#allocation2] sm:$0xf]  ;;  %s331_s2 = smov 16   ;;  %v41_v8 = vld [vmem:[#allocation2 + $0x4] sm:$0xf] }
  0x16   :  { %v332_v9 = vmov 4   ;;  %v333_v10 = vmov 0   ;;  %v334_v11 = vmov 6   ;;  %vm58_vm0 = vcmask 23552   ;;  %s335_s0 = smov 126   ;;  %s336_s13 = smov 127  }
  0x17   :  { %vm61_vm1 = vcmask 154624   ;;  %s337_s14 = smov 125   ;;  %s338_s15 = smov 124   ;;  %v38_v36 = vld [vmem:[%s426_s3] sm:$0xf]  ;;  %vm167_vm2 = vcmask 125952  }
  0x18   :  { %s339_s16 = smov 123   ;;  %s340_s17 = smov 122   ;;  %v39_v39 = vld [vmem:[%s427_s4] sm:$0xf] }
  0x19   :  { %264 = vset.pattern.permute.xlu0 %v328_v4  ;;  %44 = vrot.lane.b32.xlu1 %v35_v3, %s329_s11  ;;  %s341_s3 = smov [#allocation5]  }
  0x1a   :  { %88 = vperm.xlu0 %264, %v37_v2   ;;  %267 = vset.pattern.permute.xlu1 %v330_v6  ;;  %s232_s4 = sshll.u32 %s341_s3, 4  ;;  %s233_s4 = int_to_ptr.vmem [resolvable:$true] %s232_s4 }
  0x1b   :  { %s297_s22 = scalar_lea.vmem %s233_s4, 128  ;;  %p302_p9 = scmp.lt.s32.totalorder %s233_s4, %s233_s4 }
  0x1c   :  { %p298_p8 = scmp.ne.s32.totalorder %s233_s4, %s297_s22  ;;  %p303_p10 = scmp.lt.s32.totalorder %s297_s22, %s297_s22 }
  0x1d   :  { %46 = vrot.lane.b32.xlu1 %v36_v5, %s329_s11 }
  0x1e   :  { %52 = vrot.lane.b32.xlu0 %v40_v7, %s331_s2  ;;  %p304_p11 = por %p303_p10, %p302_p9 }
  0x1f   :  { %266 = vset.pattern.permute.xlu0 %v332_v9 }
  0x20   :  { %p305_p12 = pnand %p304_p11, %p298_p8 }
  0x21   :  { %54 = vrot.lane.b32.xlu1 %v41_v8, %s331_s2 }
  0x22   :  { %120 = vperm.xlu0 %266, %v37_v2  }
  0x25   :  { %136 = vperm.xlu1 %267, %v37_v2  }
  0x26   :  { %269 = vset.pattern.permute.xlu0 %v333_v10 }
  0x27   :  { %66 = vperm.xlu0 %269, %v37_v2  }
  0x29   :  { %268 = vset.pattern.permute.xlu1 %v334_v11 }
  0x2a   :  { %152 = vperm.xlu1 %268, %v37_v2  }
  0x2e   :  { %270 = vset.pattern.permute.xlu1 %v333_v10 }
  0x94   :  { %v105_v12 = vpop.permute.xlu1 %104  ;;  %v73_v13 = vpop.permute.xlu0 %72 }
  0x98   :  { %v45_v14 = vpop.permute.xlu1 %44 }
  0x99   :  { %v89_v15 = vpop.permute.xlu0 %88  ;;  %v59_v17 = vsel %vm58_vm0, %v40_v7, %v45_v14 }
  0x9c   :  { %v47_v16 = vpop.permute.xlu1 %46 }
  0x9d   :  { %v53_v18 = vpop.permute.xlu0 %52  ;;  %v60_v22 = vsel %vm58_vm0, %v41_v8, %v47_v16 }
  0x9e   :  { %v62_v19 = vsel %vm61_vm1, %v59_v17, %v53_v18 }
  0x9f   :  { %v91_v20 = vmul.f32 %v89_v15, %v62_v19  ;;  %v75_v21 = vmul.f32 %v73_v13, %v62_v19  ;;  %v107_v26 = vmul.f32 %v105_v12, %v62_v19 }
  0xa0   :  { %v55_v23 = vpop.permute.xlu1 %54 }
  0xa1   :  { %v63_v24 = vsel %vm61_vm1, %v60_v22, %v55_v23  ;;  %95 = vrot.lane.b32.xlu0 %v91_v20, %s335_s0  ;;  %79 = vrot.lane.b32.xlu1 %v75_v21, %s336_s13  ;;  %v121_v27 = vpop.permute.xlu0 %120 }
  0xa2   :  { %v76_v25 = vmul.f32 %v73_v13, %v63_v24  ;;  %v123_v29 = vmul.f32 %v121_v27, %v62_v19  ;;  %v92_v30 = vmul.f32 %v89_v15, %v63_v24  ;;  %v108_v32 = vmul.f32 %v105_v12, %v63_v24 }
  0xa3   :  { %v124_v34 = vmul.f32 %v121_v27, %v63_v24 }
  0xa4   :  { %v137_v28 = vpop.permute.xlu1 %136 }
  0xa5   :  { %111 = vrot.lane.b32.xlu0 %v107_v26, %s337_s14  ;;  %81 = vrot.lane.b32.xlu1 %v76_v25, %s336_s13  ;;  %v139_v31 = vmul.f32 %v137_v28, %v62_v19  ;;  %v140_v37 = vmul.f32 %v137_v28, %v63_v24 }
  0xa6   :  { %v67_v40 = vpop.permute.xlu0 %66 }
  0xa7   :  { %v69_v43 = vmul.f32 %v67_v40, %v62_v19  ;;  %v70_v53 = vmul.f32 %v67_v40, %v63_v24 }
  0xa9   :  { %127 = vrot.lane.b32.xlu0 %v123_v29, %s338_s15  ;;  %97 = vrot.lane.b32.xlu1 %v92_v30, %s335_s0  ;;  %v153_v33 = vpop.permute.xlu1 %152 }
  0xaa   :  { %v155_v35 = vmul.f32 %v153_v33, %v62_v19  ;;  %v156_v38 = vmul.f32 %v153_v33, %v63_v24 }
  0xad   :  { %113 = vrot.lane.b32.xlu1 %v108_v32, %s337_s14  ;;  %143 = vrot.lane.b32.xlu0 %v139_v31, %s339_s16 }
  0xb1   :  { %129 = vrot.lane.b32.xlu1 %v124_v34, %s338_s15  ;;  %159 = vrot.lane.b32.xlu0 %v155_v35, %s340_s17 }
  0xb5   :  { %145 = vrot.lane.b32.xlu1 %v140_v37, %s339_s16  ;;  %213 = vperm.xlu0 %269, %v38_v36  }
  0xb9   :  { %161 = vrot.lane.b32.xlu1 %v156_v38, %s340_s17 }
  0xbd   :  { %220 = vperm.xlu1 %270, %v39_v39  }
 0x113   :  { %v96_v41 = vpop.permute.xlu0 %95  ;;  %v80_v42 = vpop.permute.xlu1 %79 }
 0x114   :  { %v85_v44 = vadd.f32 %v80_v42, %v69_v43 }
 0x116   :  { %v101_v47 = vadd.f32 %v96_v41, %v85_v44 }
 0x117   :  { %v112_v45 = vpop.permute.xlu0 %111  ;;  %v82_v46 = vpop.permute.xlu1 %81 }
 0x118   :  { %v117_v50 = vadd.f32 %v112_v45, %v101_v47  ;;  %v86_v55 = vadd.f32 %v82_v46, %v70_v53 }
 0x11b   :  { %v128_v48 = vpop.permute.xlu0 %127  ;;  %v98_v49 = vpop.permute.xlu1 %97 }
 0x11c   :  { %v133_v54 = vadd.f32 %v128_v48, %v117_v50  ;;  %v102_v59 = vadd.f32 %v98_v49, %v86_v55 }
 0x11f   :  { %v144_v51 = vpop.permute.xlu0 %143  ;;  %v114_v52 = vpop.permute.xlu1 %113 }
 0x120   :  { %v149_v56 = vadd.f32 %v144_v51, %v133_v54  ;;  %v118_v61 = vadd.f32 %v114_v52, %v102_v59 }
 0x123   :  { %v160_v57 = vpop.permute.xlu0 %159  ;;  %v130_v58 = vpop.permute.xlu1 %129 }
 0x124   :  { %v165_v60 = vadd.f32 %v160_v57, %v149_v56  ;;  %v134_v1 = vadd.f32 %v130_v58, %v118_v61 }
 0x126   :  { %v168_v62 = vsel %vm167_vm2, %v165_v60, 0.0 }
 0x127   :  { %v169_v63 = vrot.slane %v168_v62, 4  ;;  %v146_v0 = vpop.permute.xlu1 %145 }
 0x128   :  { %v150_v3 = vadd.f32 %v146_v0, %v134_v1 }
 0x129   :  { %v170_v2 = vadd.f32 %v169_v63, %v168_v62 }
 0x12b   :  { %v171_v4 = vrot.slane %v170_v2, 2  ;;  %v162_v5 = vpop.permute.xlu1 %161 }
 0x12c   :  { %v166_v6 = vadd.f32 %v162_v5, %v150_v3 }
 0x12d   :  { %v172_v7 = vadd.f32 %v171_v4, %v170_v2 }
 0x12e   :  { %v175_v8 = vsel %vm167_vm2, %v166_v6, 0.0 }
 0x12f   :  { %v173_v9 = vrot.slane %v172_v7, 1  ;;  %v176_v10 = vrot.slane %v175_v8, 4 }
 0x131   :  { %v174_v11 = vadd.f32 %v173_v9, %v172_v7  ;;  %v177_v12 = vadd.f32 %v176_v10, %v175_v8 }
 0x133   :  { %v183_v13 = vmul.f32 0.25, %v174_v11  ;;  %v178_v14 = vrot.slane %v177_v12, 2 }
 0x134   :  { %v214_v43 = vpop.permute.xlu0 %213 }
 0x135   :  { %v185_v15 = vsub.f32 %v165_v60, %v183_v13  ;;  %v179_v16 = vadd.f32 %v178_v14, %v177_v12 }
 0x137   :  { %v187_v17 = vmul.f32 %v185_v15, %v185_v15  ;;  %v180_v18 = vrot.slane %v179_v16, 1 }
 0x139   :  { %v189_v19 = vsel %vm167_vm2, %v187_v17, 0.0  ;;  %v181_v20 = vadd.f32 %v180_v18, %v179_v16 }
 0x13a   :  { %v190_v21 = vrot.slane %v189_v19, 4 }
 0x13b   :  { %v184_v22 = vmul.f32 0.25, %v181_v20 }
 0x13c   :  { %v191_v23 = vadd.f32 %v190_v21, %v189_v19  ;;  %v221_v44 = vpop.permute.xlu1 %220 }
 0x13d   :  { %v186_v24 = vsub.f32 %v166_v6, %v184_v22 }
 0x13e   :  { %v192_v25 = vrot.slane %v191_v23, 2 }
 0x13f   :  { %v188_v26 = vmul.f32 %v186_v24, %v186_v24 }
 0x140   :  { %v193_v27 = vadd.f32 %v192_v25, %v191_v23 }
 0x141   :  { %v196_v28 = vsel %vm167_vm2, %v188_v26, 0.0 }
 0x142   :  { %v194_v29 = vrot.slane %v193_v27, 1  ;;  %v197_v30 = vrot.slane %v196_v28, 4 }
 0x144   :  { %v195_v31 = vadd.f32 %v194_v29, %v193_v27  ;;  %v198_v32 = vadd.f32 %v197_v30, %v196_v28 }
 0x146   :  { %v203_v33 = vmul.f32 0.25, %v195_v31  ;;  %v199_v34 = vrot.slane %v198_v32, 2 }
 0x148   :  { %v205_v35 = vadd.f32 1e-05, %v203_v33  ;;  %v200_v36 = vadd.f32 %v199_v34, %v198_v32 }
 0x14a   :  { %271 = vrsqrt.f32 %v205_v35  ;;  %v201_v37 = vrot.slane %v200_v36, 1 }
 0x14c   :  { %v202_v38 = vadd.f32 %v201_v37, %v200_v36 }
 0x14e   :  { %v204_v39 = vmul.f32 0.25, %v202_v38 }
 0x150   :  { %v206_v40 = vadd.f32 1e-05, %v204_v39 }
 0x152   :  { %273 = vrsqrt.f32 %v206_v40 }
 0x154   :  { %v272_v41 = vpop.eup %271 }
 0x155   :  { %v209_v42 = vmul.f32 %v272_v41, %v185_v15 }
 0x157   :  { %v216_v45 = vmul.f32 %v214_v43, %v209_v42 }
 0x159   :  { %v223_v46 = vadd.f32 %v221_v44, %v216_v45 }
 0x15b   :  { %225 = vst.msk [vmem:[#allocation5] sm:$0xf] %vm167_vm2, %v223_v46 }
 0x15c   :  { %v274_v47 = vpop.eup %273 }
 0x15d   :  { %v210_v48 = vmul.f32 %v274_v47, %v186_v24 }
 0x15f   :  { %v217_v49 = vmul.f32 %v214_v43, %v210_v48 }
 0x161   :  { %v224_v50 = vadd.f32 %v221_v44, %v217_v49 }
 0x163   :  { %226 = vst.msk [vmem:[#allocation5 + $0x4] sm:$0xf] %vm167_vm2, %v224_v50 }
 0x164   :  { %308 = shalt.err (!%p305_p12)
}
 0x165   :  { %s309_s25 = scalar_lea.hbm %s428_s5, 128 }
 0x166   :  { %p310_p13 = scmp.ne.s32.totalorder %s428_s5, %s309_s25  ;;  %p313_p0 = scmp.lt.u32.totalorder %s309_s25, %s428_s5 }
 0x168   :  { %p315_p1 = pnand %p313_p0, %p310_p13 }
 0x16a   :  { %318 = shalt.err (!%p315_p1)
}
 0x16b   :  { %238 = dma.vmem_to_hbm [thread:$0]  %s233_s4, 128, %s428_s5, [#allocation4], %s324_s28, %s324_s28, %s325_s29  }
 0x16c   :  { %321 = dma.done.wait [#allocation4], 128  }
 0x16d   :  { %322 = vsyncadd [#allocation4], 4294967168 }
 0x16e   :  { %242 = vsyncpa [#allocation3], 1 }
 0x16f   :  { %243 = vsyncpa [#allocation4], 1 }

</bundles_post_ra>
